<compile_context>
chip_gen: v7x
topology: tpu7x:2x2x1
jax: 0.10.0
libtpu: 0.0.40
codegen_flags: <defaults>
</compile_context>

<pallas_src>
import math
import functools

import jax
import jax.numpy as jnp
from jax.experimental import pallas as pl
from jax.experimental.pallas import tpu as pltpu


def _attention_kernel(x_ref, wq_ref, wk_ref, wv_ref, bq_ref, bk_ref, bv_ref,
                      wproj_ref, bproj_ref, o_ref, acc_ref,
                      *, block_b: int, seq_len: int, scale: float):
    h = pl.program_id(1)

    @pl.when(h == 0)
    def _init():
        acc_ref[...] = jnp.zeros_like(acc_ref)

    x = x_ref[...]                     # (R, D), R = block_b * seq_len
    cdtype = x.dtype                   # MXU compute dtype (f32 here, bf16-ready)

    # Per-head Q/K/V projections: (R, D) @ (D, hd) + (1, hd), f32 accumulation.
    q = jnp.dot(x, wq_ref[0], preferred_element_type=jnp.float32) + bq_ref[0]
    k = jnp.dot(x, wk_ref[0], preferred_element_type=jnp.float32) + bk_ref[0]
    v = jnp.dot(x, wv_ref[0], preferred_element_type=jnp.float32) + bv_ref[0]
    q = q * scale                      # fold 1/sqrt(hd) into q (R*hd <= T*T work)

    hd = q.shape[-1]
    q3 = q.astype(cdtype).reshape(block_b, seq_len, hd)
    k3 = k.astype(cdtype).reshape(block_b, seq_len, hd)
    v3 = v.astype(cdtype).reshape(block_b, seq_len, hd)

    # Batched (over the block_b batch elements) attention for this head.
    s = jnp.einsum('btd,bsd->bts', q3, k3,
                   preferred_element_type=jnp.float32)          # (b, T, T) f32
    s = s - jnp.max(s, axis=-1, keepdims=True)                  # f32 softmax
    p = jnp.exp(s)
    denom = jnp.sum(p, axis=-1, keepdims=True)
    p = p * pl.reciprocal(denom, approx=True)                   # EUP, frees VALU

    attn = jnp.einsum('bts,bsd->btd', p.astype(cdtype), v3,
                      preferred_element_type=jnp.float32)       # (b, T, hd)
    attn2 = attn.reshape(block_b * seq_len, hd).astype(cdtype)  # (R, hd)

    # Accumulate this head's slice of the output projection.
    acc_ref[...] += jnp.dot(attn2, wproj_ref[0],
                            preferred_element_type=jnp.float32)

    @pl.when(h == pl.num_programs(1) - 1)
    def _finalize():
        o_ref[...] = (acc_ref[...] + bproj_ref[...]).astype(o_ref.dtype)


def attention_forward(x, w_qkv, b_qkv, w_proj, b_proj, *, n_heads: int):
    """x: (B, T, D); w_qkv: (D, 3D); b_qkv: (1, 3D); w_proj: (D, D); b_proj: (1, D).

    Weights are stored pre-transposed (in_features, out_features), matching the
    PyTorch module's `y = x @ W.T + b` with W the nn.Linear weight.
    """
    B, T, D = x.shape
    hd = D // n_heads

    # --- choose how many batch elements each grid step processes ------------
    # Target ~256 rows per step so the projection matmuls are sublane-dense.
    block_b = max(1, min(B, max(1, 256 // max(T, 1))))
    while B % block_b:
        block_b -= 1
    if (block_b * T) % 8 != 0:
        block_b = B            # full-extent row block always satisfies tiling
    rows = block_b * T

    # --- restructure params into per-head blocks (cheap, wrapper-side XLA) --
    w4 = w_qkv.reshape(D, 3, n_heads, hd)                # [in, (q|k|v), head, hd]
    w_q = jnp.transpose(w4[:, 0], (1, 0, 2))             # (H, D, hd)
    w_k = jnp.transpose(w4[:, 1], (1, 0, 2))
    w_v = jnp.transpose(w4[:, 2], (1, 0, 2))
    b4 = b_qkv.reshape(3, n_heads, 1, hd)                # (3, H, 1, hd)
    b_q, b_k, b_v = b4[0], b4[1], b4[2]                  # (H, 1, hd)
    w_p = w_proj.reshape(n_heads, hd, D)                 # (H, hd, D)

    x2 = x.reshape(B * T, D)

    kernel = functools.partial(_attention_kernel, block_b=block_b, seq_len=T,
                               scale=1.0 / math.sqrt(hd))

    itemsize = jnp.dtype(x.dtype).itemsize
    flops = (2 * B * T * D * 3 * D            # QKV projection
             + 4 * B * n_heads * T * T * hd   # scores + PV
             + 2 * B * T * D * D)             # output projection
    bytes_accessed = int(
        2 * B * T * D * itemsize
        + sum(int(a.size) * jnp.dtype(a.dtype).itemsize
              for a in (w_qkv, b_qkv, w_proj, b_proj)))
    cost = pl.CostEstimate(flops=int(flops),
                           transcendentals=int(B * n_heads * T * T),
                           bytes_accessed=bytes_accessed)

    out2 = pl.pallas_call(
        kernel,
        out_shape=jax.ShapeDtypeStruct((B * T, D), x.dtype),
        grid_spec=pltpu.PrefetchScalarGridSpec(
            num_scalar_prefetch=0,
            grid=(B // block_b, n_heads),                  # heads = reduction axis
            in_specs=[
                pl.BlockSpec((rows, D), lambda r, h: (r, 0)),      # x rows
                pl.BlockSpec((1, D, hd), lambda r, h: (h, 0, 0)),  # W_q[h]
                pl.BlockSpec((1, D, hd), lambda r, h: (h, 0, 0)),  # W_k[h]
                pl.BlockSpec((1, D, hd), lambda r, h: (h, 0, 0)),  # W_v[h]
                pl.BlockSpec((1, 1, hd), lambda r, h: (h, 0, 0)),  # b_q[h]
                pl.BlockSpec((1, 1, hd), lambda r, h: (h, 0, 0)),  # b_k[h]
                pl.BlockSpec((1, 1, hd), lambda r, h: (h, 0, 0)),  # b_v[h]
                pl.BlockSpec((1, hd, D), lambda r, h: (h, 0, 0)),  # W_proj[h]
                pl.BlockSpec((1, D), lambda r, h: (0, 0)),         # b_proj
            ],
            out_specs=pl.BlockSpec((rows, D), lambda r, h: (r, 0)),
            scratch_shapes=[pltpu.VMEM((rows, D), jnp.float32)],
        ),
        compiler_params=pltpu.CompilerParams(
            dimension_semantics=("parallel", "arbitrary")),
        cost_estimate=cost,
    )(x2, w_q, w_k, w_v, b_q, b_k, b_v, w_p, b_proj)

    return out2.reshape(B, T, D)


def _reference_forward(x, w_qkv, b_qkv, w_proj, b_proj, *, n_heads: int):
    """Plain-JAX reference mirroring the PyTorch forward pass."""
    B, T, D = x.shape
    hd = D // n_heads
    qkv = x @ w_qkv + b_qkv[0]
    q, k, v = jnp.split(qkv, 3, axis=-1)

    def to_heads(t):
        return t.reshape(B, T, n_heads, hd).transpose(0, 2, 1, 3)  # (B, H, T, hd)

    q, k, v = to_heads(q), to_heads(k), to_heads(v)
    s = jnp.einsum("bhtd,bhsd->bhts", q, k) * (1.0 / math.sqrt(hd))
    p = jax.nn.softmax(s, axis=-1)
    o = jnp.einsum("bhts,bhsd->bhtd", p, v)
    o = o.transpose(0, 2, 1, 3).reshape(B, T, D)
    return o @ w_proj + b_proj[0]


if __name__ == "__main__":
    # Small shapes consistent with the module: B=2, T=8, dim=32, n_heads=4.
    B, T, dim, n_heads = 2, 8, 32, 4

    key = jax.random.PRNGKey(0)
    kx, kw1, kb1, kw2, kb2 = jax.random.split(key, 5)

    x = jax.random.normal(kx, (B, T, dim), dtype=jnp.float32)

    # nn.Linear-like uniform init; weights stored pre-transposed (in, out).
    bound_qkv = 1.0 / math.sqrt(dim)
    w_qkv = jax.random.uniform(kw1, (dim, 3 * dim), jnp.float32,
                               -bound_qkv, bound_qkv)
    b_qkv = jax.random.uniform(kb1, (1, 3 * dim), jnp.float32,
                               -bound_qkv, bound_qkv)

    bound_proj = 1.0 / math.sqrt(dim)
    w_proj = jax.random.uniform(kw2, (dim, dim), jnp.float32,
                                -bound_proj, bound_proj)
    b_proj = jax.random.uniform(kb2, (1, dim), jnp.float32,
                                -bound_proj, bound_proj)

    out = attention_forward(x, w_qkv, b_qkv, w_proj, b_proj, n_heads=n_heads)
    out = jax.block_until_ready(out)

    ref = _reference_forward(x, w_qkv, b_qkv, w_proj, b_proj, n_heads=n_heads)
    assert out.shape == (B, T, dim)
    # Tolerance accounts for the EUP approximate reciprocal in the softmax.
    assert jnp.allclose(out, ref, atol=5e-3, rtol=5e-3), "mismatch vs JAX reference"

    print("KERNEL_OK")
</pallas_src>

<mosaic_0001>
module attributes {stable_mosaic.version = 11 : i64} {
  func.func @_attention_kernel(%arg0: i32, %arg1: i32, %arg2: memref<16x32xf32, #tpu.memory_space<vmem>>, %arg3: memref<1x32x8xf32, #tpu.memory_space<vmem>>, %arg4: memref<1x32x8xf32, #tpu.memory_space<vmem>>, %arg5: memref<1x32x8xf32, #tpu.memory_space<vmem>>, %arg6: memref<1x1x8xf32, #tpu.memory_space<vmem>>, %arg7: memref<1x1x8xf32, #tpu.memory_space<vmem>>, %arg8: memref<1x1x8xf32, #tpu.memory_space<vmem>>, %arg9: memref<1x8x32xf32, #tpu.memory_space<vmem>>, %arg10: memref<1x32xf32, #tpu.memory_space<vmem>>, %arg11: memref<16x32xf32, #tpu.memory_space<vmem>>, %arg12: memref<16x32xf32, #tpu.memory_space<vmem>>) attributes {dimension_semantics = [#tpu.dimension_semantics<parallel>, #tpu.dimension_semantics<arbitrary>], iteration_bounds = array<i64: 1, 4>, scalar_prefetch = 0 : i64, scratch_operands = 1 : i64, tpu.core_type = #tpu.core_type<tc>, window_params = [{transform_indices = @transform_0, window_bounds = array<i64: 16, 32>}, {transform_indices = @transform_1, window_bounds = array<i64: 1, 32, 8>}, {transform_indices = @transform_2, window_bounds = array<i64: 1, 32, 8>}, {transform_indices = @transform_3, window_bounds = array<i64: 1, 32, 8>}, {transform_indices = @transform_4, window_bounds = array<i64: 1, 1, 8>}, {transform_indices = @transform_5, window_bounds = array<i64: 1, 1, 8>}, {transform_indices = @transform_6, window_bounds = array<i64: 1, 1, 8>}, {transform_indices = @transform_7, window_bounds = array<i64: 1, 8, 32>}, {pipeline_mode = #tpu.pipeline_mode<synchronous>, transform_indices = @transform_8, window_bounds = array<i64: 1, 32>}, {transform_indices = @transform_9, window_bounds = array<i64: 16, 32>}]} {
    %c0_i32 = arith.constant 0 : i32
    %0 = arith.cmpi eq, %arg1, %c0_i32 : i32
    %1 = arith.extui %0 : i1 to i32
    %c0_i32_0 = arith.constant 0 : i32
    %2 = arith.cmpi ne, %1, %c0_i32_0 : i32
    scf.if %2 {
      %cst_36 = arith.constant 0.000000e+00 : f32
      %52 = vector.broadcast %cst_36 : f32 to vector<16x32xf32>
      %c0_37 = arith.constant 0 : index
      %c0_38 = arith.constant 0 : index
      %53 = vector.load %arg12[%c0_37, %c0_38] : memref<16x32xf32, #tpu.memory_space<vmem>>, vector<16x32xf32>
      tpu.vector_store %arg12[%c0_37, %c0_38], %52 {strides = array<i32>} : memref<16x32xf32, #tpu.memory_space<vmem>>, vector<16x32xf32>,
    } else {
    }
    %c0 = arith.constant 0 : index
    %c0_1 = arith.constant 0 : index
    %3 = vector.load %arg2[%c0, %c0_1] : memref<16x32xf32, #tpu.memory_space<vmem>>, vector<16x32xf32>
    %c0_2 = arith.constant 0 : index
    %c0_3 = arith.constant 0 : index
    %c0_4 = arith.constant 0 : index
    %4 = vector.load %arg3[%c0_2, %c0_3, %c0_4] : memref<1x32x8xf32, #tpu.memory_space<vmem>>, vector<1x32x8xf32>
    %5 = vector.shape_cast %4 : vector<1x32x8xf32> to vector<32x8xf32>
    %cst = arith.constant dense<0.000000e+00> : vector<16x8xf32>
    %6 = tpu.matmul %3, %5, %cst {dimension_numbers = #tpu.dot_dimension_numbers<[1], [0], [0], [1], [0, 0, 1, 1], [], []>} : vector<16x32xf32>, vector<32x8xf32>, vector<16x8xf32> -> vector<16x8xf32>
    %c0_5 = arith.constant 0 : index
    %c0_6 = arith.constant 0 : index
    %c0_7 = arith.constant 0 : index
    %7 = vector.load %arg6[%c0_5, %c0_6, %c0_7] : memref<1x1x8xf32, #tpu.memory_space<vmem>>, vector<1x1x8xf32>
    %8 = vector.shape_cast %7 : vector<1x1x8xf32> to vector<1x8xf32>
    %9 = vector.broadcast %8 : vector<1x8xf32> to vector<16x8xf32>
    %10 = arith.addf %6, %9 : vector<16x8xf32>
    %c0_8 = arith.constant 0 : index
    %c0_9 = arith.constant 0 : index
    %c0_10 = arith.constant 0 : index
    %11 = vector.load %arg4[%c0_8, %c0_9, %c0_10] : memref<1x32x8xf32, #tpu.memory_space<vmem>>, vector<1x32x8xf32>
    %12 = vector.shape_cast %11 : vector<1x32x8xf32> to vector<32x8xf32>
    %cst_11 = arith.constant dense<0.000000e+00> : vector<16x8xf32>
    %13 = tpu.matmul %3, %12, %cst_11 {dimension_numbers = #tpu.dot_dimension_numbers<[1], [0], [0], [1], [0, 0, 1, 1], [], []>} : vector<16x32xf32>, vector<32x8xf32>, vector<16x8xf32> -> vector<16x8xf32>
    %c0_12 = arith.constant 0 : index
    %c0_13 = arith.constant 0 : index
    %c0_14 = arith.constant 0 : index
    %14 = vector.load %arg7[%c0_12, %c0_13, %c0_14] : memref<1x1x8xf32, #tpu.memory_space<vmem>>, vector<1x1x8xf32>
    %15 = vector.shape_cast %14 : vector<1x1x8xf32> to vector<1x8xf32>
    %16 = vector.broadcast %15 : vector<1x8xf32> to vector<16x8xf32>
    %17 = arith.addf %13, %16 : vector<16x8xf32>
    %c0_15 = arith.constant 0 : index
    %c0_16 = arith.constant 0 : index
    %c0_17 = arith.constant 0 : index
    %18 = vector.load %arg5[%c0_15, %c0_16, %c0_17] : memref<1x32x8xf32, #tpu.memory_space<vmem>>, vector<1x32x8xf32>
    %19 = vector.shape_cast %18 : vector<1x32x8xf32> to vector<32x8xf32>
    %cst_18 = arith.constant dense<0.000000e+00> : vector<16x8xf32>
    %20 = tpu.matmul %3, %19, %cst_18 {dimension_numbers = #tpu.dot_dimension_numbers<[1], [0], [0], [1], [0, 0, 1, 1], [], []>} : vector<16x32xf32>, vector<32x8xf32>, vector<16x8xf32> -> vector<16x8xf32>
    %c0_19 = arith.constant 0 : index
    %c0_20 = arith.constant 0 : index
    %c0_21 = arith.constant 0 : index
    %21 = vector.load %arg8[%c0_19, %c0_20, %c0_21] : memref<1x1x8xf32, #tpu.memory_space<vmem>>, vector<1x1x8xf32>
    %22 = vector.shape_cast %21 : vector<1x1x8xf32> to vector<1x8xf32>
    %23 = vector.broadcast %22 : vector<1x8xf32> to vector<16x8xf32>
    %24 = arith.addf %20, %23 : vector<16x8xf32>
    %cst_22 = arith.constant 0.353553385 : f32
    %25 = vector.broadcast %cst_22 : f32 to vector<16x8xf32>
    %26 = arith.mulf %10, %25 : vector<16x8xf32>
    %27 = vector.shape_cast %26 : vector<16x8xf32> to vector<2x8x8xf32>
    %28 = vector.shape_cast %17 : vector<16x8xf32> to vector<2x8x8xf32>
    %29 = vector.shape_cast %24 : vector<16x8xf32> to vector<2x8x8xf32>
    "tpu.trace_start"() <{level = 10 : i32, message = "btd,bsd->bts"}> : () -> ()
    %cst_23 = arith.constant dense<0.000000e+00> : vector<2x8x8xf32>
    %30 = tpu.matmul %27, %28, %cst_23 {dimension_numbers = #tpu.dot_dimension_numbers<[2], [2], [1], [1], [0, 0, 0, 1, 1, 1], [0], [0]>} : vector<2x8x8xf32>, vector<2x8x8xf32>, vector<2x8x8xf32> -> vector<2x8x8xf32>
    "tpu.trace_stop"() : () -> ()
    %cst_24 = arith.constant dense<0xFF800000> : vector<2x8xf32>
    %31 = vector.multi_reduction <maximumf>, %30, %cst_24 [2] : vector<2x8x8xf32> to vector<2x8xf32>
    %32 = vector.shape_cast %31 : vector<2x8xf32> to vector<2x8x1xf32>
    %33 = vector.broadcast %32 : vector<2x8x1xf32> to vector<2x8x8xf32>
    %34 = arith.subf %30, %33 : vector<2x8x8xf32>
    %35 = math.exp %34 : vector<2x8x8xf32>
    %cst_25 = arith.constant dense<0.000000e+00> : vector<2x8xf32>
    %36 = vector.multi_reduction <add>, %35, %cst_25 [2] : vector<2x8x8xf32> to vector<2x8xf32>
    %37 = vector.shape_cast %36 : vector<2x8xf32> to vector<2x8x1xf32>
    %38 = tpu.reciprocal %37 {approx = true} : vector<2x8x1xf32> -> vector<2x8x1xf32>
    %39 = vector.broadcast %38 : vector<2x8x1xf32> to vector<2x8x8xf32>
    %40 = arith.mulf %35, %39 : vector<2x8x8xf32>
    "tpu.trace_start"() <{level = 10 : i32, message = "bts,bsd->btd"}> : () -> ()
    %cst_26 = arith.constant dense<0.000000e+00> : vector<2x8x8xf32>
    %41 = tpu.matmul %40, %29, %cst_26 {dimension_numbers = #tpu.dot_dimension_numbers<[2], [1], [1], [2], [0, 0, 0, 1, 1, 2], [0], [0]>} : vector<2x8x8xf32>, vector<2x8x8xf32>, vector<2x8x8xf32> -> vector<2x8x8xf32>
    "tpu.trace_stop"() : () -> ()
    %42 = vector.shape_cast %41 : vector<2x8x8xf32> to vector<16x8xf32>
    %c0_27 = arith.constant 0 : index
    %c0_28 = arith.constant 0 : index
    %43 = vector.load %arg12[%c0_27, %c0_28] : memref<16x32xf32, #tpu.memory_space<vmem>>, vector<16x32xf32>
    %c0_29 = arith.constant 0 : index
    %c0_30 = arith.constant 0 : index
    %c0_31 = arith.constant 0 : index
    %44 = vector.load %arg9[%c0_29, %c0_30, %c0_31] : memref<1x8x32xf32, #tpu.memory_space<vmem>>, vector<1x8x32xf32>
    %45 = vector.shape_cast %44 : vector<1x8x32xf32> to vector<8x32xf32>
    %cst_32 = arith.constant dense<0.000000e+00> : vector<16x32xf32>
    %46 = tpu.matmul %42, %45, %cst_32 {dimension_numbers = #tpu.dot_dimension_numbers<[1], [0], [0], [1], [0, 0, 1, 1], [], []>} : vector<16x8xf32>, vector<8x32xf32>, vector<16x32xf32> -> vector<16x32xf32>
    %47 = arith.addf %43, %46 : vector<16x32xf32>
    %c0_33 = arith.constant 0 : index
    %c0_34 = arith.constant 0 : index
    %48 = vector.load %arg12[%c0_33, %c0_34] : memref<16x32xf32, #tpu.memory_space<vmem>>, vector<16x32xf32>
    tpu.vector_store %arg12[%c0_33, %c0_34], %47 {strides = array<i32>} : memref<16x32xf32, #tpu.memory_space<vmem>>, vector<16x32xf32>,
    %c3_i32 = arith.constant 3 : i32
    %49 = arith.cmpi eq, %arg1, %c3_i32 : i32
    %50 = arith.extui %49 : i1 to i32
    %c0_i32_35 = arith.constant 0 : i32
    %51 = arith.cmpi ne, %50, %c0_i32_35 : i32
    scf.if %51 {
      %c0_36 = arith.constant 0 : index
      %c0_37 = arith.constant 0 : index
      %52 = vector.load %arg12[%c0_36, %c0_37] : memref<16x32xf32, #tpu.memory_space<vmem>>, vector<16x32xf32>
      %c0_38 = arith.constant 0 : index
      %c0_39 = arith.constant 0 : index
      %53 = vector.load %arg10[%c0_38, %c0_39] : memref<1x32xf32, #tpu.memory_space<vmem>>, vector<1x32xf32>
      %54 = vector.broadcast %53 : vector<1x32xf32> to vector<16x32xf32>
      %55 = arith.addf %52, %54 : vector<16x32xf32>
      %c0_40 = arith.constant 0 : index
      %c0_41 = arith.constant 0 : index
      %56 = vector.load %arg11[%c0_40, %c0_41] : memref<16x32xf32, #tpu.memory_space<vmem>>, vector<16x32xf32>
      tpu.vector_store %arg11[%c0_40, %c0_41], %55 {strides = array<i32>} : memref<16x32xf32, #tpu.memory_space<vmem>>, vector<16x32xf32>,
    } else {
    }
    return
  }
  func.func @transform_0(%arg0: i32, %arg1: i32) -> (i32, i32) {
    %c0_i32 = arith.constant 0 : i32
    %c0_i32_0 = arith.constant 0 : i32
    return %arg0, %c0_i32 : i32, i32
  }
  func.func @transform_1(%arg0: i32, %arg1: i32) -> (i32, i32, i32) {
    %c0_i32 = arith.constant 0 : i32
    %c0_i32_0 = arith.constant 0 : i32
    %c0_i32_1 = arith.constant 0 : i32
    return %arg1, %c0_i32, %c0_i32_0 : i32, i32, i32
  }
  func.func @transform_2(%arg0: i32, %arg1: i32) -> (i32, i32, i32) {
    %c0_i32 = arith.constant 0 : i32
    %c0_i32_0 = arith.constant 0 : i32
    %c0_i32_1 = arith.constant 0 : i32
    return %arg1, %c0_i32, %c0_i32_0 : i32, i32, i32
  }
  func.func @transform_3(%arg0: i32, %arg1: i32) -> (i32, i32, i32) {
    %c0_i32 = arith.constant 0 : i32
    %c0_i32_0 = arith.constant 0 : i32
    %c0_i32_1 = arith.constant 0 : i32
    return %arg1, %c0_i32, %c0_i32_0 : i32, i32, i32
  }
  func.func @transform_4(%arg0: i32, %arg1: i32) -> (i32, i32, i32) {
    %c0_i32 = arith.constant 0 : i32
    %c0_i32_0 = arith.constant 0 : i32
    %c0_i32_1 = arith.constant 0 : i32
    return %arg1, %c0_i32, %c0_i32_0 : i32, i32, i32
  }
  func.func @transform_5(%arg0: i32, %arg1: i32) -> (i32, i32, i32) {
    %c0_i32 = arith.constant 0 : i32
    %c0_i32_0 = arith.constant 0 : i32
    %c0_i32_1 = arith.constant 0 : i32
    return %arg1, %c0_i32, %c0_i32_0 : i32, i32, i32
  }
  func.func @transform_6(%arg0: i32, %arg1: i32) -> (i32, i32, i32) {
    %c0_i32 = arith.constant 0 : i32
    %c0_i32_0 = arith.constant 0 : i32
    %c0_i32_1 = arith.constant 0 : i32
    return %arg1, %c0_i32, %c0_i32_0 : i32, i32, i32
  }
  func.func @transform_7(%arg0: i32, %arg1: i32) -> (i32, i32, i32) {
    %c0_i32 = arith.constant 0 : i32
    %c0_i32_0 = arith.constant 0 : i32
    %c0_i32_1 = arith.constant 0 : i32
    return %arg1, %c0_i32, %c0_i32_0 : i32, i32, i32
  }
  func.func @transform_8(%arg0: i32, %arg1: i32) -> (i32, i32) {
    %c0_i32 = arith.constant 0 : i32
    %c0_i32_0 = arith.constant 0 : i32
    %c0_i32_1 = arith.constant 0 : i32
    return %c0_i32, %c0_i32_0 : i32, i32
  }
  func.func @transform_9(%arg0: i32, %arg1: i32) -> (i32, i32) {
    %c0_i32 = arith.constant 0 : i32
    %c0_i32_0 = arith.constant 0 : i32
    return %arg0, %c0_i32 : i32, i32
  }
}

</mosaic_0001>

<bundles_post_ra>
// kernel: tpu_custom_call.1
= control target key start
LH: loop header
LB: loop body
LE: loop exit
PB: predicated region body
PF: predicated region fallthrough
CT: control target
= control target key end

     0   :  { %s1753_s0 = inlined_call_operand.vmem [shape: f32[16,32], index: 0, kind: input, shape index: {}]   ;;  %s1754_s1 = inlined_call_operand.vmem [shape: f32[4,32,8], index: 1, kind: input, shape index: {}]   ;;  %s1755_s2 = inlined_call_operand.vmem [shape: f32[4,32,8], index: 2, kind: input, shape index: {}]   ;;  %s1756_s3 = inlined_call_operand.vmem [shape: f32[4,32,8], index: 3, kind: input, shape index: {}]   ;;  %s1757_s4 = inlined_call_operand.vmem [shape: f32[4,1,8], index: 4, kind: input, shape index: {}]   ;;  %s1758_s5 = inlined_call_operand.vmem [shape: f32[4,1,8], index: 5, kind: input, shape index: {}]   ;;  %s1759_s6 = inlined_call_operand.vmem [shape: f32[4,1,8], index: 6, kind: input, shape index: {}]   ;;  %s1760_s7 = inlined_call_operand.vmem [shape: f32[4,8,32], index: 7, kind: input, shape index: {}]   ;;  %s1761_s8 = inlined_call_operand.vmem [shape: f32[1,32], index: 8, kind: input, shape index: {}]   ;;  %s1762_s9 = inlined_call_operand.hbm [shape: f32[16,32], index: 9, kind: output, shape index: {}]  }
   0x1   :  { %1763 = sst [smem:[#allocation7_spill]] %s1754_s1 }
   0x2   :  { %14 = vsyncpa [#allocation4], 0  ;;  %s1604_s30 = smov 0   ;;  %s1606_s10 = smov 0  }
   0x3   :  { %s1608_s11 = smov 0  }
   0x4 LB: > { %s29_s13 = sadd.s32 1, %s1542_s10  ;;  %p1304_p1 = scmp.ge.s32.totalorder %s1546_s11, 1  ;;  %s1546_s11 = sphi %s1608_s11, %s20_s11   ;;  %s1542_s10 = sphi %s1606_s10, %s1771_s10   ;;  %s1538_s30 = sphi %s1604_s30, %s1770_s30  }
   0x5   : > { %p30_p0 = scmp.ge.s32.totalorder %s29_s13, 4  ;;  %p364_p2 = scmp.lt.s32.totalorder %s1546_s11, 5 }
   0x7   : > { %s1773_s13 = smov (%p30_p0, %s29_s13), 0  ;;  %p365_p3 = pnand %p1304_p1, %p364_p2 }
   0x8   : > { %1764 = sst [smem:[#allocation6_spill]] %s1773_s13  ;;  %p429_p4 = scmp.lt.s32.totalorder (!%p365_p3), %s1538_s30, 3 }
   0x9   : > { %368 = sbr.rel (%p365_p3) target bundleno = 1247 (0x4df), region = 56  ;;  %s1765_s1 = sld [smem:[#allocation7_spill]] (!%p365_p3) }
   0xa   : > { %p1312_p5 = scmp.ne.s32.totalorder (!%p365_p3), %s1538_s30, 0 }
  0x10   : > { %s1627_s14 = scalar_select %p429_p4, %s1538_s30, 3 }
  0x11   : > { %461 = sbr.rel (%p1312_p5) target bundleno = 24 (0x18), region = 60  ;;  %vm462_vm0 = vcmask (!%p1312_p5), 261120   ;;  %v1548_v0 = vmov (!%p1312_p5), 0.0  }
  0x12   : > { %s1336_s15 = sshll.u32 %s1627_s14, 5  ;;  %s449_s12 = scalar_lea.vmem %s1758_s5, %s1627_s14  ;;  %463 = vst.msk [vmem:[#allocation2] sm:$0xff] (!%p1312_p5), %vm462_vm0, %v1548_v0  ;;  %464 = vst.msk [vmem:[#allocation2 + $0x8] sm:$0xff] (!%p1312_p5), %vm462_vm0, %v1548_v0 }
  0x13   : > { %s433_s21 = scalar_lea.vmem %s1765_s1, %s1336_s15  ;;  %s438_s24 = scalar_lea.vmem %s1755_s2, %s1336_s15 }
  0x14   : > { %s1643_s27 = scalar_lea.vmem %s1756_s3, %s1336_s15  ;;  %s452_s17 = scalar_lea.vmem %s1759_s6, %s1627_s14 }
  0x15   : > { %s1311_s18 = sshll.u32 %s1627_s14, 3 }
  0x16   : > { %s1657_s1 = scalar_lea.vmem %s1760_s7, %s1311_s18 }
  0x18 PF: > { %v560_v1 = vld [vmem:[%s438_s24] sm:$0xff]  ;;  %v561_v2 = vld [vmem:[%s438_s24 + $0x8] sm:$0xff]  ;;  %vm478_vm1 = vcmask 261120   ;;  %v562_v6 = vld [vmem:[%s438_s24 + $0x10] sm:$0xff]  ;;  %v1549_v15 = vmov 0.0   ;;  %vm1550_vm2 = vmmov 0   ;;  %s1766_s26 = scalar_lea.vmem %s1757_s4, %s1627_s14 }
  0x19   : > { %v467_v3 = vld [vmem:[%s433_s21] sm:$0xff]  ;;  %v1434_v4 = vpack.c.bf16 %v561_v2, %v560_v1  ;;  %v468_v5 = vld [vmem:[%s433_s21 + $0x8] sm:$0xff]  ;;  %v563_v7 = vld [vmem:[%s438_s24 + $0x18] sm:$0xff]  ;;  %vm734_vm3 = vcmask 64512   ;;  %p1330_p6 = scmp.ne.s32.totalorder %s1538_s30, 3 }
  0x1a   : > { %v1426_v8 = vpack.c.bf16 %v468_v5, %v467_v3  ;;  %v1438_v9 = vpack.c.bf16 %v563_v7, %v562_v6  ;;  %v469_v10 = vld [vmem:[%s433_s21 + $0x10] sm:$0xff]  ;;  %v470_v11 = vld [vmem:[%s433_s21 + $0x18] sm:$0xff]  ;;  %v465_v12 = vld [vmem:[%s1753_s0] sm:$0xff] }
  0x1b   : > { %1435 = vmatprep.subr.bf16.mxu1 %v1434_v4  ;;  %v1430_v13 = vpack.c.bf16 %v470_v11, %v469_v10  ;;  %1387 = vmatprep.mubr.msk.f32.mxu1 %vm478_vm1, %v465_v12  ;;  %v466_v14 = vld [vmem:[%s1753_s0 + $0x8] sm:$0xff]  ;;  %v1316_v16 = vld [vmem:[%s449_s12] ss:$0 sm:$0xff]  ;;  %v648_v30 = vld [vmem:[%s1643_s27 + $0x10] sm:$0xff] }
  0x1c   : > { %1427 = vmatprep.subr.bf16.mxu0 %v1426_v8  ;;  %1437 = vmatpush3.bf16.msra.mxu1 %v1434_v4  ;;  %v1313_v18 = vld [vmem:[%s1766_s26] ss:$0 sm:$0xff]  ;;  %v647_v29 = vld [vmem:[%s1643_s27 + $0x8] sm:$0xff]  ;;  %v649_v32 = vld [vmem:[%s1643_s27 + $0x18] sm:$0xff] }
  0x1d   : > { %1429 = vmatpush3.bf16.msra.mxu0 %v1426_v8  ;;  %1439 = vmatprep.subr.bf16.mxu1 %v1438_v9  ;;  %v646_v28 = vld [vmem:[%s1643_s27] sm:$0xff]  ;;  %v1446_v33 = vpack.c.bf16 %v649_v32, %v648_v30  ;;  %v1056_v2 = vld [vmem:[#allocation2 + $0x8] sm:$0xff] }
  0x1e   : > { %1431 = vmatprep.subr.bf16.mxu0 %v1430_v13  ;;  %1376 = vmatprep.mubr.msk.f32.mxu0 %vm478_vm1, %v465_v12  ;;  %v1442_v31 = vpack.c.bf16 %v647_v29, %v646_v28  ;;  %v1319_v51 = vld [vmem:[%s452_s17] ss:$0 sm:$0xff] }
  0x1f   : > { %v1057_v61 = vld [vmem:[%s1657_s1] sm:$0xff] }
  0x20   : > { %1441 = vmatpush3.bf16.msra.mxu1 %v1438_v9  ;;  %v1055_v3 = vld [vmem:[#allocation2] sm:$0xff] }
  0x21   : > { %1433 = vmatpush3.bf16.msra.mxu0 %v1430_v13  ;;  %1401 = vmatprep.subr.mxu1 %v1549_v15  ;;  %v1331_v9 = vld [vmem:[%s1761_s8] ss:$0 sm:$0xff] (!%p1330_p6) }
  0x22   : > { %1443 = vmatprep.subr.bf16.mxu0 %v1442_v31 }
  0x23   : > { %1388 = vmatmul.mubr.msk.f32.vlgmr.msra.gmra.mrb[0].mxu1 %vm478_vm1, %v466_v14 }
  0x24   : > { %1377 = vmatmul.mubr.msk.f32.vlgmr.msra.gmra.mrb[0].mxu0 %vm478_vm1, %v466_v14  ;;  %1403 = vmatprep.mubr.msk.f32.mxu1 %vm1550_vm2, %v1549_v15 }
  0x25   : > { %1398 = vmatprep.mubr.msk.f32.mxu0 %vm478_vm1, %v465_v12  ;;  %1445 = vmatpush3.bf16.msra.mxu0 %v1442_v31 }
  0x26   : > { %1447 = vmatprep.subr.bf16.mxu0 %v1446_v33 }
  0x29   : > { %1449 = vmatpush3.bf16.msra.mxu0 %v1446_v33 }
  0x2a   : > { %1411 = vmatprep.subr.mxu0 %v1549_v15 }
  0x2c   : > { %1399 = vmatmul.mubr.msk.f32.vlgmr.msra.gmra.mrb[2].mxu0 %vm478_vm1, %v466_v14 }
  0x2d   : > { %1413 = vmatprep.mubr.msk.f32.mxu0 %vm1550_vm2, %v1549_v15 }
  0xf6   : > { %v1389_v17 = vpop.f32.mrb[0].mxu1 }
  0xf7   : > { %v1378_v19 = vpop.f32.mrb[0].mxu0  ;;  %v637_v20 = vpop.f32.mrb[1].mxu1  ;;  %v643_v26 = vadd.f32 %v1389_v17, %v1316_v16 }
  0xf8   : > { %v638_v21 = vadd.f32 %v1316_v16, %v637_v20  ;;  %v551_v22 = vpop.f32.mrb[1].mxu0  ;;  %v557_v24 = vadd.f32 %v1378_v19, %v1313_v18 }
  0xf9   : > { %v552_v23 = vadd.f32 %v1313_v18, %v551_v22 }
  0xfa   : > { %1402 = vmatpush3.xpose.msk.msra.mxu1 %vm734_vm3, %v638_v21  ;;  %v733_v27 = vmul.f32 0.35355338, %v557_v24 }
  0xfb   : > { %v732_v25 = vmul.f32 0.35355338, %v552_v23  ;;  %1406 = vmatprep.subr.mxu1 %v1549_v15 }
  0xfd   : > { %1404 = vmatmul.mubr.msk.f32.vlgmr.msra.gmra.mrb[2].mxu1 %vm734_vm3, %v732_v25 }
  0xfe   : > { %1407 = vmatpush3.xpose.msk.msra.mxu1 %vm734_vm3, %v643_v26  ;;  %1408 = vmatprep.mubr.msk.f32.mxu1 %vm1550_vm2, %v1549_v15 }
  0xff   : > { %1416 = vmatprep.subr.mxu1 %v1549_v15  ;;  %v1400_v50 = vpop.f32.mrb[2].mxu0 }
 0x100   : > { %v723_v52 = vpop.f32.mrb[3].mxu0  ;;  %v729_v54 = vadd.f32 %v1400_v50, %v1319_v51 }
 0x101   : > { %1409 = vmatmul.mubr.msk.f32.vlgmr.msra.gmra.mrb[4].mxu1 %vm734_vm3, %v733_v27  ;;  %v724_v53 = vadd.f32 %v1319_v51, %v723_v52 }
 0x102   : > { %1418 = vmatprep.mubr.msk.f32.mxu1 %vm1550_vm2, %v1549_v15  ;;  %1417 = vmatpush3.msra.mxu1 %v729_v54 }
 0x103   : > { %1412 = vmatpush3.msra.mxu0 %v724_v53 }
 0x104   : > { %1421 = vmatprep.subr.mxu0 %v1057_v61 }
 0x1d0   : > { %v807_v34 = vpop.f32.mrb[2].mxu1 }
 0x1d1   : > { %v1405_v35 = vpop.f32.mrb[3].mxu1  ;;  %v887_v36 = vsel %vm734_vm3, %v807_v34, -inf }
 0x1d2   : > { %888 = vmax.xlane.f32.xlu0 %v887_v36 }
 0x1d4   : > { %v883_v37 = vpop.f32.mrb[4].mxu1 }
 0x1d5   : > { %v1410_v38 = vpop.f32.mrb[5].mxu1  ;;  %v890_v39 = vsel %vm734_vm3, %v883_v37, -inf }
 0x1d6   : > { %891 = vmax.xlane.f32.xlu0 %v890_v39 }
 0x25f   : > { %v889_v40 = vpop.xlane.xlu0 %888 }
 0x260   : > { %v893_v41 = vsub.f32 %v807_v34, %v889_v40 }
 0x262   : > { %v895_v42 = vmul.f32 1.442695, %v893_v41 }
 0x263   : > { %v892_v43 = vpop.xlane.xlu0 %891 }
 0x264   : > { %1486 = vpow2.f32 %v895_v42  ;;  %v894_v44 = vsub.f32 %v883_v37, %v892_v43 }
 0x266   : > { %v897_v45 = vmul.f32 1.442695, %v894_v44 }
 0x268   : > { %1488 = vpow2.f32 %v897_v45 }
 0x26e   : > { %v1487_v46 = vpop.eup %1486 }
 0x26f   : > { %v899_v47 = vsel %vm734_vm3, %v1487_v46, 0.0 }
 0x270   : > { %900 = vadd.xlane.f32.xlu1 %v899_v47 }
 0x272   : > { %v1489_v48 = vpop.eup %1488 }
 0x273   : > { %v902_v49 = vsel %vm734_vm3, %v1489_v48, 0.0 }
 0x274   : > { %903 = vadd.xlane.f32.xlu1 %v902_v49 }
 0x2fd   : > { %v901_v55 = vpop.xlane.xlu1 %900 }
 0x2fe   : > { %1490 = vrcp.f32 %v901_v55 }
 0x301   : > { %v904_v56 = vpop.xlane.xlu1 %903 }
 0x302   : > { %1492 = vrcp.f32 %v904_v56 }
 0x308   : > { %v1491_v57 = vpop.eup %1490 }
 0x309   : > { %v907_v58 = vmul.f32 %v1491_v57, %v1487_v46 }
 0x30b   : > { %1414 = vmatmul.mubr.msk.f32.vlgmr.msra.gmra.mrb[4].mxu0 %vm734_vm3, %v907_v58 }
 0x30c   : > { %v1493_v59 = vpop.eup %1492  ;;  %1422 = vmatpush3.msra.mxu0 %v1057_v61 }
 0x30d   : > { %v908_v60 = vmul.f32 %v1493_v59, %v1489_v48 }
 0x30f   : > { %1419 = vmatmul.mubr.msk.f32.vlgmr.msra.gmra.mrb[6].mxu1 %vm734_vm3, %v908_v60 }
 0x3de   : > { %v978_v62 = vpop.f32.mrb[4].mxu0 }
 0x3df   : > { %v1415_v63 = vpop.f32.mrb[5].mxu0  ;;  %1423 = vmatprep.mubr.msk.f32.mxu0 %vm734_vm3, %v978_v62 }
 0x3e2   : > { %v1051_v0 = vpop.f32.mrb[6].mxu1 }
 0x3e3   : > { %v1420_v1 = vpop.f32.mrb[7].mxu1  ;;  %1424 = vmatmul.mubr.msk.f32.vlgmr.msra.gmra.mrb[6].mxu0 %vm734_vm3, %v1051_v0 }
 0x4b4   : > { %1146 = sbr.rel (%p1330_p6) target bundleno = 1221 (0x4c5), region = 64 }
 0x4b6   : > { %v1425_v4 = vpop.f32.mrb[6].mxu0 }
 0x4b7   : > { %v1140_v5 = vadd.f32 %v1425_v4, %v1056_v2  ;;  %v1130_v6 = vpop.f32.mrb[7].mxu0 }
 0x4b8   : > { %v1139_v7 = vadd.f32 %v1130_v6, %v1055_v3 }
 0x4b9   : > { %1142 = vst.msk [vmem:[#allocation2 + $0x8] sm:$0xff] %vm478_vm1, %v1140_v5 }
 0x4ba   : > { %1141 = vst.msk [vmem:[#allocation2] sm:$0xff] %vm478_vm1, %v1139_v7 }
 0x4c0   : > { %v1148_v10 = vld [vmem:[#allocation2 + $0x8] sm:$0xff] }
 0x4c1   : > { %v1147_v8 = vld [vmem:[#allocation2] sm:$0xff]  ;;  %v1157_v12 = vadd.f32 %v1331_v9, %v1148_v10 }
 0x4c2   : > { %v1156_v11 = vadd.f32 %v1331_v9, %v1147_v8 }
 0x4c3   : > { %1159 = vst.msk [vmem:[#allocation3 + $0x8] sm:$0xff] %vm478_vm1, %v1157_v12 }
 0x4c4   : > { %1158 = vst.msk [vmem:[#allocation3] sm:$0xff] %vm478_vm1, %v1156_v11 }
 0x4c5 PF: > { %s1767_s28 = sadd.s32 4294967295, %s1546_s11   ;;  %s1551_s30 = smov [#allocation3]  }
 0x4c6   : > { %p1718_p7 = scmp.eq.s32.totalorder %s1767_s28, 3  ;;  %s1169_s16 = sshll.u32 %s1551_s30, 4  ;;  %s1170_s16 = int_to_ptr.vmem [resolvable:$true] %s1169_s16 }
 0x4c7   : > { %s1494_s17 = scalar_lea.vmem %s1170_s16, 256  ;;  %p1501_p11 = scmp.lt.s32.totalorder %s1170_s16, %s1170_s16 }
 0x4c8   : > { %p1495_p8 = scmp.ne.s32.totalorder %s1170_s16, %s1494_s17  ;;  %p1502_p12 = scmp.lt.s32.totalorder %s1494_s17, %s1494_s17 }
 0x4ca   : > { %p1496_p9 = pnand %p1495_p8, %p1718_p7  ;;  %p1503_p13 = por %p1502_p12, %p1501_p11 }
 0x4cc   : > { %p1497_p10 = pneg %p1496_p9 }
 0x4ce   : > { %p1504_p0 = pnand %p1503_p13, %p1497_p10 }
 0x4d0   : > { %1507 = shalt.err (!%p1504_p0)
}
 0x4d1   : > { %s1508_s13 = scalar_lea.hbm %s1762_s9, 256 }
 0x4d2   : > { %p1509_p1 = scmp.ne.s32.totalorder %s1762_s9, %s1508_s13  ;;  %p1514_p4 = scmp.lt.u32.totalorder %s1508_s13, %s1762_s9 }
 0x4d4   : > { %p1510_p2 = pnand %p1509_p1, %p1718_p7 }
 0x4d6   : > { %p1511_p3 = pneg %p1510_p2 }
 0x4d8   : > { %p1516_p5 = pnand %p1514_p4, %p1511_p3 }
 0x4da   : > { %1519 = shalt.err (!%p1516_p5)
}
 0x4db   : > { %s1552_s23 = smov 128   ;;  %s1553_s24 = smov 8  }
 0x4dc   : > { %1451 = dma.vmem_to_hbm [thread:$0]  (%p1718_p7), %s1170_s16, 256, %s1762_s9, [#allocation4], %s1552_s23, %s1552_s23, %s1553_s24  }
 0x4dd   : > { %1533 = dma.done.wait (%p1718_p7), [#allocation4], 256  }
 0x4de   : > { %1535 = vsyncadd (%p1718_p7), [#allocation4], 4294967040 }
 0x4df PF: > { %s20_s11 = sadd.s32 1, %s1546_s11   ;;  %s1769_s12 = sld [smem:[#allocation6_spill]] }
 0x4e0   : > { %p17_p6 = scmp.ge.s32.totalorder %s20_s11, 6   ;;  %s1770_s30 = smov %s1542_s10 }
 0x4e2   :  { %19 = sbr.rel (!%p17_p6) target bundleno = 4 (0x4), region = 113 }
 0x4e5   : > { %s1771_s10 = smov %s1769_s12 }
 0x4e9   :  { %1185 = vsyncpa [#allocation4], 1 }
 0x4ea   :  { %1187 = vsyncpa [#allocation4 + $0x1], 1 }

</bundles_post_ra>
